<compile_context>
chip_gen: v7x
topology: tpu7x:2x2x1
jax: 0.10.0
libtpu: 0.0.40
codegen_flags: <defaults>
</compile_context>

<pallas_src>
import numpy as np
import jax
import jax.numpy as jnp
from jax import lax
from jax.experimental import pallas as pl
from jax.experimental.pallas import tpu as pltpu

NEG_SLOPE = 0.2


def _leaky(x):
    return jnp.where(x > 0, x, NEG_SLOPE * x)


# ----------------------------- Pallas kernel --------------------------------
def down_block_kernel(xh_ref, g1_ref, b1_ref, rmm_ref, gf2_ref,
                      rmh_ref, kaw_ref, b2_ref, out_ref):
    # xh_ref : (NB, H+2, W*Cin)        bf16  H-padded input, lanes = (w, ci)
    # g1_ref : (3, W*Cin, W*Cout)      bf16  banded conv1 matrices (per dh)
    # b1_ref : (1, W*Cout)             f32   conv1 bias tiled over w
    # rmm_ref: (6, NB*S/2, NB*H)       bf16  kron(I_NB, Shift(dh-1)@P_h)[p::2]
    # gf2_ref: (6, W*Cout, 2*S*Cout)   bf16  (kpw @ G2[dh]) placed in lane half p
    # rmh_ref: (2, NB*S/2, NB*H)       bf16  kron(I_NB, A_h[p::2])
    # kaw_ref: (2, W*Cout, 2*S*Cout)   bf16  kron(A_w^T, I_C) placed in lane half p
    # b2_ref : (1, 2*S*Cout)           f32
    # out_ref: (NB*S/2, 2*S*Cout)      f32   rows=(n,i//2), lanes=(i%2, j, co)
    NB, Hp, WCi = xh_ref.shape
    H = Hp - 2

    # ---- conv1 + bias + LeakyReLU: 3 banded matmuls, K = W*Cin, bf16xbf16 ----
    acc1 = None
    for dh in range(3):
        rows = xh_ref[:, dh:dh + H, :].reshape(NB * H, WCi)
        t = jnp.dot(rows, g1_ref[dh], preferred_element_type=jnp.float32)
        acc1 = t if acc1 is None else acc1 + t
    res = _leaky(acc1 + b1_ref[...]).astype(jnp.bfloat16)      # (NB*H, W*Cout)

    # ---- main = LeakyReLU(conv2(avgpool(res)) + b2) ----
    # pool rows + conv2 row shift folded into rmm, W-pool folded into gf2;
    # output-row parity p is packed into the lane dimension (lane-dense store).
    acc2 = None
    for k in range(6):                                          # k = 2*dh + p
        z = jnp.dot(rmm_ref[k], res, preferred_element_type=jnp.float32)
        t = jnp.dot(z.astype(jnp.bfloat16), gf2_ref[k],
                    preferred_element_type=jnp.float32)
        acc2 = t if acc2 is None else acc2 + t
    main = _leaky(acc2 + b2_ref[...])                           # (NB*S/2, 2*S*Cout)

    # ---- half = bilinear(res, size=S, align_corners=True), separable ----
    half = None
    for p in range(2):
        z = jnp.dot(rmh_ref[p], res, preferred_element_type=jnp.float32)
        t = jnp.dot(z.astype(jnp.bfloat16), kaw_ref[p],
                    preferred_element_type=jnp.float32)
        half = t if half is None else half + t

    out_ref[...] = (main + half).astype(out_ref.dtype)


# --------------------------- host-side helpers -------------------------------
def _bilinear_matrix(out_size, in_size):
    # F.interpolate(mode='bilinear', align_corners=True) along one axis.
    A = np.zeros((out_size, in_size), np.float32)
    if out_size == 1:
        A[0, 0] = 1.0
        return A
    scale = (in_size - 1) / (out_size - 1)
    for i in range(out_size):
        src = i * scale
        h0 = int(np.floor(src))
        h1 = min(h0 + 1, in_size - 1)
        f = src - h0
        A[i, h0] += 1.0 - f
        A[i, h1] += f
    return A


def _pool_matrix(out_size, in_size):
    # AvgPool2d(2,2) along one axis.
    P = np.zeros((out_size, in_size), np.float32)
    for i in range(out_size):
        P[i, 2 * i] = 0.5
        P[i, 2 * i + 1] = 0.5
    return P


def _banded_conv_mats(w_oihw, width):
    """3x3 / pad=1 conv in the (row, (col,channel)) layout.

    G[dh][win*Cin + ci, wout*Cout + co] = w[co, ci, dh, dw] with
    win = wout + dw - 1 (zero padding along W folded into the band)."""
    w_hwio = np.transpose(np.asarray(w_oihw, np.float32), (2, 3, 1, 0))
    cin, cout = w_hwio.shape[2], w_hwio.shape[3]
    mats = np.zeros((3, width * cin, width * cout), np.float32)
    for dh in range(3):
        for dw in range(3):
            shift = np.eye(width, k=1 - dw, dtype=np.float32)
            mats[dh] += np.kron(shift, w_hwio[dh, dw])
    return mats


def down_block(x_nchw, w1, b1, w2, b2, *, batch_block=None):
    """x: (N,Cin,H,W); w1: (Cout,Cin,3,3); w2: (Cout,Cout,3,3) (torch layouts)."""
    N, Cin, H, W = x_nchw.shape
    assert H == W and H % 2 == 0, "DownBlock assumes a square, even-sized input"
    Cout = w1.shape[0]
    S = W // 2
    assert S % 2 == 0, "parity lane packing assumes an even output size"
    # NB = N//2 by default so grid >= 2 (both v7x TensorCores busy, DMA overlap).
    NB = batch_block if batch_block is not None else max(1, min(8, N // 2))
    assert N % NB == 0
    G = N // NB
    WCi, WCo, SCo = W * Cin, W * Cout, S * Cout

    # ---- input: NCHW -> rows=(n,h) (H-padded), lanes=(w,ci), bf16 ----
    x_nhwc = jnp.transpose(x_nchw, (0, 2, 3, 1))
    xh = jnp.pad(x_nhwc, ((0, 0), (1, 1), (0, 0), (0, 0)))
    xh = xh.reshape(N, H + 2, WCi).astype(jnp.bfloat16)

    # ---- host-built matrices (f32 math, stored bf16 for the MXU) ----
    G1 = _banded_conv_mats(np.asarray(w1), W)                 # (3, W*Cin,  W*Cout)
    G2 = _banded_conv_mats(np.asarray(w2), S)                 # (3, S*Cout, S*Cout)
    ph, ah = _pool_matrix(S, H), _bilinear_matrix(S, H)
    pw, aw = _pool_matrix(S, W), _bilinear_matrix(S, W)
    eye_c = np.eye(Cout, dtype=np.float32)
    eye_nb = np.eye(NB, dtype=np.float32)
    kpw = np.kron(pw.T, eye_c)                                # (W*Cout, S*Cout)
    kaw = np.kron(aw.T, eye_c)

    rmm = np.zeros((6, NB * S // 2, NB * H), np.float32)
    gf2 = np.zeros((6, WCo, 2 * SCo), np.float32)
    for dh in range(3):
        Fd = kpw @ G2[dh]                                     # W-pool folded into conv2
        Qd = np.eye(S, k=dh - 1, dtype=np.float32) @ ph       # conv2 row shift folded into H-pool
        for p in range(2):
            k = 2 * dh + p
            rmm[k] = np.kron(eye_nb, Qd[p::2])
            gf2[k, :, p * SCo:(p + 1) * SCo] = Fd
    rmh = np.zeros((2, NB * S // 2, NB * H), np.float32)
    kawp = np.zeros((2, WCo, 2 * SCo), np.float32)
    for p in range(2):
        rmh[p] = np.kron(eye_nb, ah[p::2])
        kawp[p, :, p * SCo:(p + 1) * SCo] = kaw

    g1_b = jnp.asarray(G1, jnp.bfloat16)
    rmm_b = jnp.asarray(rmm, jnp.bfloat16)
    gf2_b = jnp.asarray(gf2, jnp.bfloat16)
    rmh_b = jnp.asarray(rmh, jnp.bfloat16)
    kaw_b = jnp.asarray(kawp, jnp.bfloat16)
    b1l = jnp.asarray(np.tile(np.asarray(b1, np.float32), W).reshape(1, WCo))
    b2l = jnp.asarray(np.tile(np.asarray(b2, np.float32), 2 * S).reshape(1, 2 * SCo))

    # explicit VMEM budget from the actual resident footprint (+ headroom)
    weight_bytes = sum(int(np.prod(a.shape)) * a.dtype.itemsize
                       for a in (g1_b, rmm_b, gf2_b, rmh_b, kaw_b, b1l, b2l))
    block_bytes = NB * (H + 2) * WCi * 2 + (NB * S // 2) * 2 * SCo * 4
    vmem_limit = int(min(64 << 20,
                         max(16 << 20, 2 * (weight_bytes + block_bytes) + (4 << 20))))

    out = pl.pallas_call(
        down_block_kernel,
        # rows = (n_local, i//2); lanes = (grid step, i%2, j, co)  -> 128-dense blocks
        out_shape=jax.ShapeDtypeStruct((NB * S // 2, G * 2 * SCo), jnp.float32),
        grid_spec=pltpu.PrefetchScalarGridSpec(
            num_scalar_prefetch=0,
            grid=(G,),
            in_specs=[
                pl.BlockSpec((NB, H + 2, WCi), lambda g: (g, 0, 0)),
                pl.BlockSpec((3, WCi, WCo), lambda g: (0, 0, 0)),
                pl.BlockSpec((1, WCo), lambda g: (0, 0)),
                pl.BlockSpec((6, NB * S // 2, NB * H), lambda g: (0, 0, 0)),
                pl.BlockSpec((6, WCo, 2 * SCo), lambda g: (0, 0, 0)),
                pl.BlockSpec((2, NB * S // 2, NB * H), lambda g: (0, 0, 0)),
                pl.BlockSpec((2, WCo, 2 * SCo), lambda g: (0, 0, 0)),
                pl.BlockSpec((1, 2 * SCo), lambda g: (0, 0)),
            ],
            out_specs=pl.BlockSpec((NB * S // 2, 2 * SCo), lambda g: (0, g)),
        ),
        compiler_params=pltpu.CompilerParams(
            dimension_semantics=("parallel",),
            vmem_limit_bytes=vmem_limit),
    )(xh, g1_b, b1l, rmm_b, gf2_b, rmh_b, kaw_b, b2l)

    # unpack: (rows=(n_local,i2), lanes=(g,p,j,co)) -> (N, Cout, S, S)
    out6 = out.reshape(NB, S // 2, G, 2, S, Cout)
    out6 = jnp.transpose(out6, (2, 0, 5, 1, 3, 4))
    return out6.reshape(N, Cout, S, S)


# ------------------------- pure-JAX reference --------------------------------
def down_block_ref(x, w1, b1, w2, b2):
    def conv(t, w, b):
        y = lax.conv_general_dilated(t, w, (1, 1), ((1, 1), (1, 1)),
                                     dimension_numbers=('NCHW', 'OIHW', 'NCHW'))
        return y + b[None, :, None, None]

    res = _leaky(conv(x, w1, b1))
    pooled = lax.reduce_window(res, 0.0, lax.add, (1, 1, 2, 2),
                               (1, 1, 2, 2), 'VALID') * 0.25
    main = _leaky(conv(pooled, w2, b2))
    S = x.shape[-1] // 2
    Ah = jnp.asarray(_bilinear_matrix(S, x.shape[-2]))
    Aw = jnp.asarray(_bilinear_matrix(S, x.shape[-1]))
    half = jnp.einsum('ih,jw,nchw->ncij', Ah, Aw, res)
    return main + half


# --------------------------------- main --------------------------------------
if __name__ == "__main__":
    key = jax.random.PRNGKey(0)
    k1, k2, k3, k4, k5 = jax.random.split(key, 5)
    N, Cin, H, W = 2, 4, 16, 16
    Cout = 8

    x = jax.random.normal(k1, (N, Cin, H, W), jnp.float32)
    w1 = jax.random.normal(k2, (Cout, Cin, 3, 3), jnp.float32) * 0.1
    b1 = jax.random.normal(k3, (Cout,), jnp.float32) * 0.1
    w2 = jax.random.normal(k4, (Cout, Cout, 3, 3), jnp.float32) * 0.1
    b2 = jax.random.normal(k5, (Cout,), jnp.float32) * 0.1

    out = down_block(x, w1, b1, w2, b2)
    out = jax.block_until_ready(out)

    ref = down_block_ref(x, w1, b1, w2, b2)
    # bf16 MXU operands with f32 accumulation -> compare at ~2% tolerance.
    np.testing.assert_allclose(np.asarray(out), np.asarray(ref),
                               atol=2e-2, rtol=2e-2)
    print("KERNEL_OK")
</pallas_src>

<mosaic_0001>
module attributes {stable_mosaic.version = 11 : i64} {
  func.func @down_block_kernel(%arg0: i32, %arg1: memref<1x18x64xbf16, #tpu.memory_space<vmem>>, %arg2: memref<3x64x128xbf16, #tpu.memory_space<vmem>>, %arg3: memref<1x128xf32, #tpu.memory_space<vmem>>, %arg4: memref<6x4x16xbf16, #tpu.memory_space<vmem>>, %arg5: memref<6x128x128xbf16, #tpu.memory_space<vmem>>, %arg6: memref<2x4x16xbf16, #tpu.memory_space<vmem>>, %arg7: memref<2x128x128xbf16, #tpu.memory_space<vmem>>, %arg8: memref<1x128xf32, #tpu.memory_space<vmem>>, %arg9: memref<4x128xf32, #tpu.memory_space<vmem>>) attributes {dimension_semantics = [#tpu.dimension_semantics<parallel>], iteration_bounds = array<i64: 2>, scalar_prefetch = 0 : i64, scratch_operands = 0 : i64, tpu.core_type = #tpu.core_type<tc>, window_params = [{transform_indices = @transform_0, window_bounds = array<i64: 1, 18, 64>}, {pipeline_mode = #tpu.pipeline_mode<synchronous>, transform_indices = @transform_1, window_bounds = array<i64: 3, 64, 128>}, {pipeline_mode = #tpu.pipeline_mode<synchronous>, transform_indices = @transform_2, window_bounds = array<i64: 1, 128>}, {pipeline_mode = #tpu.pipeline_mode<synchronous>, transform_indices = @transform_3, window_bounds = array<i64: 6, 4, 16>}, {pipeline_mode = #tpu.pipeline_mode<synchronous>, transform_indices = @transform_4, window_bounds = array<i64: 6, 128, 128>}, {pipeline_mode = #tpu.pipeline_mode<synchronous>, transform_indices = @transform_5, window_bounds = array<i64: 2, 4, 16>}, {pipeline_mode = #tpu.pipeline_mode<synchronous>, transform_indices = @transform_6, window_bounds = array<i64: 2, 128, 128>}, {pipeline_mode = #tpu.pipeline_mode<synchronous>, transform_indices = @transform_7, window_bounds = array<i64: 1, 128>}, {transform_indices = @transform_8, window_bounds = array<i64: 4, 128>}]} {
    %c0 = arith.constant 0 : index
    %c0_0 = arith.constant 0 : index
    %c0_1 = arith.constant 0 : index
    %0 = vector.load %arg1[%c0, %c0_0, %c0_1] : memref<1x18x64xbf16, #tpu.memory_space<vmem>>, vector<1x16x64xbf16>
    %1 = vector.shape_cast %0 : vector<1x16x64xbf16> to vector<16x64xbf16>
    %c0_2 = arith.constant 0 : index
    %c0_3 = arith.constant 0 : index
    %c0_4 = arith.constant 0 : index
    %2 = vector.load %arg2[%c0_2, %c0_3, %c0_4] : memref<3x64x128xbf16, #tpu.memory_space<vmem>>, vector<1x64x128xbf16>
    %3 = vector.shape_cast %2 : vector<1x64x128xbf16> to vector<64x128xbf16>
    %cst = arith.constant dense<0.000000e+00> : vector<16x128xf32>
    %4 = tpu.matmul %1, %3, %cst {dimension_numbers = #tpu.dot_dimension_numbers<[1], [0], [0], [1], [0, 0, 1, 1], [], []>} : vector<16x64xbf16>, vector<64x128xbf16>, vector<16x128xf32> -> vector<16x128xf32>
    %c0_5 = arith.constant 0 : index
    %c1 = arith.constant 1 : index
    %c0_6 = arith.constant 0 : index
    %5 = vector.load %arg1[%c0_5, %c1, %c0_6] : memref<1x18x64xbf16, #tpu.memory_space<vmem>>, vector<1x16x64xbf16>
    %6 = vector.shape_cast %5 : vector<1x16x64xbf16> to vector<16x64xbf16>
    %c1_7 = arith.constant 1 : index
    %c0_8 = arith.constant 0 : index
    %c0_9 = arith.constant 0 : index
    %7 = vector.load %arg2[%c1_7, %c0_8, %c0_9] : memref<3x64x128xbf16, #tpu.memory_space<vmem>>, vector<1x64x128xbf16>
    %8 = vector.shape_cast %7 : vector<1x64x128xbf16> to vector<64x128xbf16>
    %cst_10 = arith.constant dense<0.000000e+00> : vector<16x128xf32>
    %9 = tpu.matmul %6, %8, %cst_10 {dimension_numbers = #tpu.dot_dimension_numbers<[1], [0], [0], [1], [0, 0, 1, 1], [], []>} : vector<16x64xbf16>, vector<64x128xbf16>, vector<16x128xf32> -> vector<16x128xf32>
    %10 = arith.addf %4, %9 : vector<16x128xf32>
    %c0_11 = arith.constant 0 : index
    %c2 = arith.constant 2 : index
    %c0_12 = arith.constant 0 : index
    %11 = vector.load %arg1[%c0_11, %c2, %c0_12] : memref<1x18x64xbf16, #tpu.memory_space<vmem>>, vector<1x16x64xbf16>
    %12 = vector.shape_cast %11 : vector<1x16x64xbf16> to vector<16x64xbf16>
    %c2_13 = arith.constant 2 : index
    %c0_14 = arith.constant 0 : index
    %c0_15 = arith.constant 0 : index
    %13 = vector.load %arg2[%c2_13, %c0_14, %c0_15] : memref<3x64x128xbf16, #tpu.memory_space<vmem>>, vector<1x64x128xbf16>
    %14 = vector.shape_cast %13 : vector<1x64x128xbf16> to vector<64x128xbf16>
    %cst_16 = arith.constant dense<0.000000e+00> : vector<16x128xf32>
    %15 = tpu.matmul %12, %14, %cst_16 {dimension_numbers = #tpu.dot_dimension_numbers<[1], [0], [0], [1], [0, 0, 1, 1], [], []>} : vector<16x64xbf16>, vector<64x128xbf16>, vector<16x128xf32> -> vector<16x128xf32>
    %16 = arith.addf %10, %15 : vector<16x128xf32>
    %c0_17 = arith.constant 0 : index
    %c0_18 = arith.constant 0 : index
    %17 = vector.load %arg3[%c0_17, %c0_18] : memref<1x128xf32, #tpu.memory_space<vmem>>, vector<1x128xf32>
    %18 = vector.broadcast %17 : vector<1x128xf32> to vector<16x128xf32>
    %19 = arith.addf %16, %18 : vector<16x128xf32>
    %cst_19 = arith.constant 0.000000e+00 : f32
    %20 = vector.broadcast %cst_19 : f32 to vector<16x128xf32>
    %21 = arith.cmpf ogt, %19, %20 : vector<16x128xf32>
    %cst_20 = arith.constant 2.000000e-01 : f32
    %22 = vector.broadcast %cst_20 : f32 to vector<16x128xf32>
    %23 = arith.mulf %22, %19 : vector<16x128xf32>
    %24 = arith.select %21, %19, %23 : vector<16x128xi1>, vector<16x128xf32>
    %25 = arith.truncf %24 : vector<16x128xf32> to vector<16x128xbf16>
    %c0_21 = arith.constant 0 : index
    %c0_22 = arith.constant 0 : index
    %c0_23 = arith.constant 0 : index
    %26 = vector.load %arg4[%c0_21, %c0_22, %c0_23] : memref<6x4x16xbf16, #tpu.memory_space<vmem>>, vector<1x4x16xbf16>
    %27 = vector.shape_cast %26 : vector<1x4x16xbf16> to vector<4x16xbf16>
    %cst_24 = arith.constant dense<0.000000e+00> : vector<4x128xf32>
    %28 = tpu.matmul %27, %25, %cst_24 {dimension_numbers = #tpu.dot_dimension_numbers<[1], [0], [0], [1], [0, 0, 1, 1], [], []>} : vector<4x16xbf16>, vector<16x128xbf16>, vector<4x128xf32> -> vector<4x128xf32>
    %29 = arith.truncf %28 : vector<4x128xf32> to vector<4x128xbf16>
    %c0_25 = arith.constant 0 : index
    %c0_26 = arith.constant 0 : index
    %c0_27 = arith.constant 0 : index
    %30 = vector.load %arg5[%c0_25, %c0_26, %c0_27] : memref<6x128x128xbf16, #tpu.memory_space<vmem>>, vector<1x128x128xbf16>
    %31 = vector.shape_cast %30 : vector<1x128x128xbf16> to vector<128x128xbf16>
    %cst_28 = arith.constant dense<0.000000e+00> : vector<4x128xf32>
    %32 = tpu.matmul %29, %31, %cst_28 {dimension_numbers = #tpu.dot_dimension_numbers<[1], [0], [0], [1], [0, 0, 1, 1], [], []>} : vector<4x128xbf16>, vector<128x128xbf16>, vector<4x128xf32> -> vector<4x128xf32>
    %c1_29 = arith.constant 1 : index
    %c0_30 = arith.constant 0 : index
    %c0_31 = arith.constant 0 : index
    %33 = vector.load %arg4[%c1_29, %c0_30, %c0_31] : memref<6x4x16xbf16, #tpu.memory_space<vmem>>, vector<1x4x16xbf16>
    %34 = vector.shape_cast %33 : vector<1x4x16xbf16> to vector<4x16xbf16>
    %cst_32 = arith.constant dense<0.000000e+00> : vector<4x128xf32>
    %35 = tpu.matmul %34, %25, %cst_32 {dimension_numbers = #tpu.dot_dimension_numbers<[1], [0], [0], [1], [0, 0, 1, 1], [], []>} : vector<4x16xbf16>, vector<16x128xbf16>, vector<4x128xf32> -> vector<4x128xf32>
    %36 = arith.truncf %35 : vector<4x128xf32> to vector<4x128xbf16>
    %c1_33 = arith.constant 1 : index
    %c0_34 = arith.constant 0 : index
    %c0_35 = arith.constant 0 : index
    %37 = vector.load %arg5[%c1_33, %c0_34, %c0_35] : memref<6x128x128xbf16, #tpu.memory_space<vmem>>, vector<1x128x128xbf16>
    %38 = vector.shape_cast %37 : vector<1x128x128xbf16> to vector<128x128xbf16>
    %cst_36 = arith.constant dense<0.000000e+00> : vector<4x128xf32>
    %39 = tpu.matmul %36, %38, %cst_36 {dimension_numbers = #tpu.dot_dimension_numbers<[1], [0], [0], [1], [0, 0, 1, 1], [], []>} : vector<4x128xbf16>, vector<128x128xbf16>, vector<4x128xf32> -> vector<4x128xf32>
    %40 = arith.addf %32, %39 : vector<4x128xf32>
    %c2_37 = arith.constant 2 : index
    %c0_38 = arith.constant 0 : index
    %c0_39 = arith.constant 0 : index
    %41 = vector.load %arg4[%c2_37, %c0_38, %c0_39] : memref<6x4x16xbf16, #tpu.memory_space<vmem>>, vector<1x4x16xbf16>
    %42 = vector.shape_cast %41 : vector<1x4x16xbf16> to vector<4x16xbf16>
    %cst_40 = arith.constant dense<0.000000e+00> : vector<4x128xf32>
    %43 = tpu.matmul %42, %25, %cst_40 {dimension_numbers = #tpu.dot_dimension_numbers<[1], [0], [0], [1], [0, 0, 1, 1], [], []>} : vector<4x16xbf16>, vector<16x128xbf16>, vector<4x128xf32> -> vector<4x128xf32>
    %44 = arith.truncf %43 : vector<4x128xf32> to vector<4x128xbf16>
    %c2_41 = arith.constant 2 : index
    %c0_42 = arith.constant 0 : index
    %c0_43 = arith.constant 0 : index
    %45 = vector.load %arg5[%c2_41, %c0_42, %c0_43] : memref<6x128x128xbf16, #tpu.memory_space<vmem>>, vector<1x128x128xbf16>
    %46 = vector.shape_cast %45 : vector<1x128x128xbf16> to vector<128x128xbf16>
    %cst_44 = arith.constant dense<0.000000e+00> : vector<4x128xf32>
    %47 = tpu.matmul %44, %46, %cst_44 {dimension_numbers = #tpu.dot_dimension_numbers<[1], [0], [0], [1], [0, 0, 1, 1], [], []>} : vector<4x128xbf16>, vector<128x128xbf16>, vector<4x128xf32> -> vector<4x128xf32>
    %48 = arith.addf %40, %47 : vector<4x128xf32>
    %c3 = arith.constant 3 : index
    %c0_45 = arith.constant 0 : index
    %c0_46 = arith.constant 0 : index
    %49 = vector.load %arg4[%c3, %c0_45, %c0_46] : memref<6x4x16xbf16, #tpu.memory_space<vmem>>, vector<1x4x16xbf16>
    %50 = vector.shape_cast %49 : vector<1x4x16xbf16> to vector<4x16xbf16>
    %cst_47 = arith.constant dense<0.000000e+00> : vector<4x128xf32>
    %51 = tpu.matmul %50, %25, %cst_47 {dimension_numbers = #tpu.dot_dimension_numbers<[1], [0], [0], [1], [0, 0, 1, 1], [], []>} : vector<4x16xbf16>, vector<16x128xbf16>, vector<4x128xf32> -> vector<4x128xf32>
    %52 = arith.truncf %51 : vector<4x128xf32> to vector<4x128xbf16>
    %c3_48 = arith.constant 3 : index
    %c0_49 = arith.constant 0 : index
    %c0_50 = arith.constant 0 : index
    %53 = vector.load %arg5[%c3_48, %c0_49, %c0_50] : memref<6x128x128xbf16, #tpu.memory_space<vmem>>, vector<1x128x128xbf16>
    %54 = vector.shape_cast %53 : vector<1x128x128xbf16> to vector<128x128xbf16>
    %cst_51 = arith.constant dense<0.000000e+00> : vector<4x128xf32>
    %55 = tpu.matmul %52, %54, %cst_51 {dimension_numbers = #tpu.dot_dimension_numbers<[1], [0], [0], [1], [0, 0, 1, 1], [], []>} : vector<4x128xbf16>, vector<128x128xbf16>, vector<4x128xf32> -> vector<4x128xf32>
    %56 = arith.addf %48, %55 : vector<4x128xf32>
    %c4 = arith.constant 4 : index
    %c0_52 = arith.constant 0 : index
    %c0_53 = arith.constant 0 : index
    %57 = vector.load %arg4[%c4, %c0_52, %c0_53] : memref<6x4x16xbf16, #tpu.memory_space<vmem>>, vector<1x4x16xbf16>
    %58 = vector.shape_cast %57 : vector<1x4x16xbf16> to vector<4x16xbf16>
    %cst_54 = arith.constant dense<0.000000e+00> : vector<4x128xf32>
    %59 = tpu.matmul %58, %25, %cst_54 {dimension_numbers = #tpu.dot_dimension_numbers<[1], [0], [0], [1], [0, 0, 1, 1], [], []>} : vector<4x16xbf16>, vector<16x128xbf16>, vector<4x128xf32> -> vector<4x128xf32>
    %60 = arith.truncf %59 : vector<4x128xf32> to vector<4x128xbf16>
    %c4_55 = arith.constant 4 : index
    %c0_56 = arith.constant 0 : index
    %c0_57 = arith.constant 0 : index
    %61 = vector.load %arg5[%c4_55, %c0_56, %c0_57] : memref<6x128x128xbf16, #tpu.memory_space<vmem>>, vector<1x128x128xbf16>
    %62 = vector.shape_cast %61 : vector<1x128x128xbf16> to vector<128x128xbf16>
    %cst_58 = arith.constant dense<0.000000e+00> : vector<4x128xf32>
    %63 = tpu.matmul %60, %62, %cst_58 {dimension_numbers = #tpu.dot_dimension_numbers<[1], [0], [0], [1], [0, 0, 1, 1], [], []>} : vector<4x128xbf16>, vector<128x128xbf16>, vector<4x128xf32> -> vector<4x128xf32>
    %64 = arith.addf %56, %63 : vector<4x128xf32>
    %c5 = arith.constant 5 : index
    %c0_59 = arith.constant 0 : index
    %c0_60 = arith.constant 0 : index
    %65 = vector.load %arg4[%c5, %c0_59, %c0_60] : memref<6x4x16xbf16, #tpu.memory_space<vmem>>, vector<1x4x16xbf16>
    %66 = vector.shape_cast %65 : vector<1x4x16xbf16> to vector<4x16xbf16>
    %cst_61 = arith.constant dense<0.000000e+00> : vector<4x128xf32>
    %67 = tpu.matmul %66, %25, %cst_61 {dimension_numbers = #tpu.dot_dimension_numbers<[1], [0], [0], [1], [0, 0, 1, 1], [], []>} : vector<4x16xbf16>, vector<16x128xbf16>, vector<4x128xf32> -> vector<4x128xf32>
    %68 = arith.truncf %67 : vector<4x128xf32> to vector<4x128xbf16>
    %c5_62 = arith.constant 5 : index
    %c0_63 = arith.constant 0 : index
    %c0_64 = arith.constant 0 : index
    %69 = vector.load %arg5[%c5_62, %c0_63, %c0_64] : memref<6x128x128xbf16, #tpu.memory_space<vmem>>, vector<1x128x128xbf16>
    %70 = vector.shape_cast %69 : vector<1x128x128xbf16> to vector<128x128xbf16>
    %cst_65 = arith.constant dense<0.000000e+00> : vector<4x128xf32>
    %71 = tpu.matmul %68, %70, %cst_65 {dimension_numbers = #tpu.dot_dimension_numbers<[1], [0], [0], [1], [0, 0, 1, 1], [], []>} : vector<4x128xbf16>, vector<128x128xbf16>, vector<4x128xf32> -> vector<4x128xf32>
    %72 = arith.addf %64, %71 : vector<4x128xf32>
    %c0_66 = arith.constant 0 : index
    %c0_67 = arith.constant 0 : index
    %73 = vector.load %arg8[%c0_66, %c0_67] : memref<1x128xf32, #tpu.memory_space<vmem>>, vector<1x128xf32>
    %74 = vector.broadcast %73 : vector<1x128xf32> to vector<4x128xf32>
    %75 = arith.addf %72, %74 : vector<4x128xf32>
    %cst_68 = arith.constant 0.000000e+00 : f32
    %76 = vector.broadcast %cst_68 : f32 to vector<4x128xf32>
    %77 = arith.cmpf ogt, %75, %76 : vector<4x128xf32>
    %cst_69 = arith.constant 2.000000e-01 : f32
    %78 = vector.broadcast %cst_69 : f32 to vector<4x128xf32>
    %79 = arith.mulf %78, %75 : vector<4x128xf32>
    %80 = arith.select %77, %75, %79 : vector<4x128xi1>, vector<4x128xf32>
    %c0_70 = arith.constant 0 : index
    %c0_71 = arith.constant 0 : index
    %c0_72 = arith.constant 0 : index
    %81 = vector.load %arg6[%c0_70, %c0_71, %c0_72] : memref<2x4x16xbf16, #tpu.memory_space<vmem>>, vector<1x4x16xbf16>
    %82 = vector.shape_cast %81 : vector<1x4x16xbf16> to vector<4x16xbf16>
    %cst_73 = arith.constant dense<0.000000e+00> : vector<4x128xf32>
    %83 = tpu.matmul %82, %25, %cst_73 {dimension_numbers = #tpu.dot_dimension_numbers<[1], [0], [0], [1], [0, 0, 1, 1], [], []>} : vector<4x16xbf16>, vector<16x128xbf16>, vector<4x128xf32> -> vector<4x128xf32>
    %84 = arith.truncf %83 : vector<4x128xf32> to vector<4x128xbf16>
    %c0_74 = arith.constant 0 : index
    %c0_75 = arith.constant 0 : index
    %c0_76 = arith.constant 0 : index
    %85 = vector.load %arg7[%c0_74, %c0_75, %c0_76] : memref<2x128x128xbf16, #tpu.memory_space<vmem>>, vector<1x128x128xbf16>
    %86 = vector.shape_cast %85 : vector<1x128x128xbf16> to vector<128x128xbf16>
    %cst_77 = arith.constant dense<0.000000e+00> : vector<4x128xf32>
    %87 = tpu.matmul %84, %86, %cst_77 {dimension_numbers = #tpu.dot_dimension_numbers<[1], [0], [0], [1], [0, 0, 1, 1], [], []>} : vector<4x128xbf16>, vector<128x128xbf16>, vector<4x128xf32> -> vector<4x128xf32>
    %c1_78 = arith.constant 1 : index
    %c0_79 = arith.constant 0 : index
    %c0_80 = arith.constant 0 : index
    %88 = vector.load %arg6[%c1_78, %c0_79, %c0_80] : memref<2x4x16xbf16, #tpu.memory_space<vmem>>, vector<1x4x16xbf16>
    %89 = vector.shape_cast %88 : vector<1x4x16xbf16> to vector<4x16xbf16>
    %cst_81 = arith.constant dense<0.000000e+00> : vector<4x128xf32>
    %90 = tpu.matmul %89, %25, %cst_81 {dimension_numbers = #tpu.dot_dimension_numbers<[1], [0], [0], [1], [0, 0, 1, 1], [], []>} : vector<4x16xbf16>, vector<16x128xbf16>, vector<4x128xf32> -> vector<4x128xf32>
    %91 = arith.truncf %90 : vector<4x128xf32> to vector<4x128xbf16>
    %c1_82 = arith.constant 1 : index
    %c0_83 = arith.constant 0 : index
    %c0_84 = arith.constant 0 : index
    %92 = vector.load %arg7[%c1_82, %c0_83, %c0_84] : memref<2x128x128xbf16, #tpu.memory_space<vmem>>, vector<1x128x128xbf16>
    %93 = vector.shape_cast %92 : vector<1x128x128xbf16> to vector<128x128xbf16>
    %cst_85 = arith.constant dense<0.000000e+00> : vector<4x128xf32>
    %94 = tpu.matmul %91, %93, %cst_85 {dimension_numbers = #tpu.dot_dimension_numbers<[1], [0], [0], [1], [0, 0, 1, 1], [], []>} : vector<4x128xbf16>, vector<128x128xbf16>, vector<4x128xf32> -> vector<4x128xf32>
    %95 = arith.addf %87, %94 : vector<4x128xf32>
    %96 = arith.addf %80, %95 : vector<4x128xf32>
    %c0_86 = arith.constant 0 : index
    %c0_87 = arith.constant 0 : index
    %97 = vector.load %arg9[%c0_86, %c0_87] : memref<4x128xf32, #tpu.memory_space<vmem>>, vector<4x128xf32>
    tpu.vector_store %arg9[%c0_86, %c0_87], %96 {strides = array<i32>} : memref<4x128xf32, #tpu.memory_space<vmem>>, vector<4x128xf32>,
    return
  }
  func.func @transform_0(%arg0: i32) -> (i32, i32, i32) {
    %c0_i32 = arith.constant 0 : i32
    %c0_i32_0 = arith.constant 0 : i32
    %c0_i32_1 = arith.constant 0 : i32
    return %arg0, %c0_i32, %c0_i32_0 : i32, i32, i32
  }
  func.func @transform_1(%arg0: i32) -> (i32, i32, i32) {
    %c0_i32 = arith.constant 0 : i32
    %c0_i32_0 = arith.constant 0 : i32
    %c0_i32_1 = arith.constant 0 : i32
    %c0_i32_2 = arith.constant 0 : i32
    return %c0_i32, %c0_i32_0, %c0_i32_1 : i32, i32, i32
  }
  func.func @transform_2(%arg0: i32) -> (i32, i32) {
    %c0_i32 = arith.constant 0 : i32
    %c0_i32_0 = arith.constant 0 : i32
    %c0_i32_1 = arith.constant 0 : i32
    return %c0_i32, %c0_i32_0 : i32, i32
  }
  func.func @transform_3(%arg0: i32) -> (i32, i32, i32) {
    %c0_i32 = arith.constant 0 : i32
    %c0_i32_0 = arith.constant 0 : i32
    %c0_i32_1 = arith.constant 0 : i32
    %c0_i32_2 = arith.constant 0 : i32
    return %c0_i32, %c0_i32_0, %c0_i32_1 : i32, i32, i32
  }
  func.func @transform_4(%arg0: i32) -> (i32, i32, i32) {
    %c0_i32 = arith.constant 0 : i32
    %c0_i32_0 = arith.constant 0 : i32
    %c0_i32_1 = arith.constant 0 : i32
    %c0_i32_2 = arith.constant 0 : i32
    return %c0_i32, %c0_i32_0, %c0_i32_1 : i32, i32, i32
  }
  func.func @transform_5(%arg0: i32) -> (i32, i32, i32) {
    %c0_i32 = arith.constant 0 : i32
    %c0_i32_0 = arith.constant 0 : i32
    %c0_i32_1 = arith.constant 0 : i32
    %c0_i32_2 = arith.constant 0 : i32
    return %c0_i32, %c0_i32_0, %c0_i32_1 : i32, i32, i32
  }
  func.func @transform_6(%arg0: i32) -> (i32, i32, i32) {
    %c0_i32 = arith.constant 0 : i32
    %c0_i32_0 = arith.constant 0 : i32
    %c0_i32_1 = arith.constant 0 : i32
    %c0_i32_2 = arith.constant 0 : i32
    return %c0_i32, %c0_i32_0, %c0_i32_1 : i32, i32, i32
  }
  func.func @transform_7(%arg0: i32) -> (i32, i32) {
    %c0_i32 = arith.constant 0 : i32
    %c0_i32_0 = arith.constant 0 : i32
    %c0_i32_1 = arith.constant 0 : i32
    return %c0_i32, %c0_i32_0 : i32, i32
  }
  func.func @transform_8(%arg0: i32) -> (i32, i32) {
    %c0_i32 = arith.constant 0 : i32
    %c0_i32_0 = arith.constant 0 : i32
    return %c0_i32, %arg0 : i32, i32
  }
}

</mosaic_0001>

<bundles_post_ra>
// kernel: tpu_custom_call.1
= control target key start
LH: loop header
LB: loop body
LE: loop exit
PB: predicated region body
PF: predicated region fallthrough
CT: control target
= control target key end

     0   :  { %13 = vsyncpa [#allocation3], 0  ;;  %s3167_s0 = inlined_call_operand.vmem [shape: bf16[2,18,64], index: 0, kind: input, shape index: {}]   ;;  %s3168_s1 = inlined_call_operand.hbm [shape: bf16[3,64,128], index: 1, kind: input, shape index: {}]   ;;  %s3169_s2 = inlined_call_operand.vmem [shape: f32[1,128], index: 2, kind: input, shape index: {}]   ;;  %s3170_s3 = inlined_call_operand.vmem [shape: bf16[6,4,16], index: 3, kind: input, shape index: {}]   ;;  %s3171_s4 = inlined_call_operand.hbm [shape: bf16[6,128,128], index: 4, kind: input, shape index: {}]   ;;  %s3172_s5 = inlined_call_operand.vmem [shape: bf16[2,4,16], index: 5, kind: input, shape index: {}]   ;;  %s3173_s6 = inlined_call_operand.hbm [shape: bf16[2,128,128], index: 6, kind: input, shape index: {}]   ;;  %s3174_s7 = inlined_call_operand.vmem [shape: f32[1,128], index: 7, kind: input, shape index: {}]   ;;  %s3175_s8 = inlined_call_operand.hbm [shape: f32[4,256], index: 8, kind: output, shape index: {}]  }
   0x1   :  { %14 = vsyncpa [#allocation6], 0 }
   0x2   :  { %15 = vsyncpa [#allocation4], 0 }
   0x3   :  { %17 = vsyncpa [#allocation4 + $0x1], 0  ;;  %s2779_s27 = smov 0   ;;  %s2781_s28 = smov 0  }
   0x4   :  { %s2783_s29 = smov 0   ;;  %s2785_s30 = smov 0  }
   0x5 LB: > { %3183 = sst [smem:[#allocation12_spill]] %s2720_s29  ;;  %s2800_s9 = sadd.s32 4294967295, %s2724_s30   ;;  %s2724_s30 = sphi %s2785_s30, %s3200_s30   ;;  %s2720_s29 = sphi %s2783_s29, %s3202_s29   ;;  %s2716_s28 = sphi %s2781_s28, %s3204_s28   ;;  %s2712_s27 = sphi %s2779_s27, %s3203_s27  }
   0x6   : > { %s1955_s10 = sadd.s32 4294967294, %s2724_s30   ;;  %s2804_s11 = sadd.s32 1, %s2724_s30  }
   0x7   : > { %3184 = sst [smem:[#allocation13_spill]] %s2804_s11  ;;  %s203_s12 = sadd.s32 1, %s2720_s29 }
   0x8   : > { %s200_s13 = ssub.s32 %s2724_s30, %s2804_s11  ;;  %p213_p0 = scmp.ne.s32.totalorder %s2720_s29, %s2716_s28 }
   0x9   : > { %p201_p1 = scmp.eq.s32.totalorder %s200_s13, 0  ;;  %p214_p2 = scmp.eq.s32.totalorder %s2800_s9, 1 }
   0xa   : > { %p219_p3 = scmp.ne.s32.totalorder %s2716_s28, %s2712_s27  ;;  %p220_p4 = scmp.eq.s32.totalorder %s1955_s10, 1 }
   0xb   : > { %s2815_s14 = scalar_select %p201_p1, %s2720_s29, %s203_s12  }
   0xc   : > { %p2817_p5 = por %p214_p2, %p213_p0  ;;  %p2821_p6 = por %p220_p4, %p219_p3 }
   0xd   : > { %3185 = sst [smem:[#allocation14_spill]] %s2815_s14  ;;  %p1956_p7 = scmp.ge.s32.totalorder %s2724_s30, 1 }
   0xe   : > { %s3186_s15 = scalar_select %p2817_p5, 1, 0 }
   0xf   : > { %s3187_s16 = scalar_select %p2821_p6, 1, 0 }
  0x10   : > { %p227_p8 = scmp.lt.s32.totalorder %s2724_s30, 3  ;;  %p3176_p9 = scmp.eq.s32.totalorder %s2800_s9, 0 }
  0x11   : > { %3188 = sst [smem:[#allocation15_spill]] %s3187_s16  ;;  %s2726_s18 = smov [#allocation5]  }
  0x12   : > { %p2828_p10 = pnand %p1956_p7, %p227_p8  ;;  %s258_s19 = sshll.u32 %s2726_s18, 4  ;;  %s2834_s19 = int_to_ptr.vmem [resolvable:$true] %s258_s19 }
  0x13   : > { %s2727_s21 = smov [#allocation2]   ;;  %s2728_s23 = smov [#allocation7]  }
  0x14   : > { %s3189_s17 = scalar_select %p2828_p10, 1, 0 }
  0x15   : > { %p2431_p11 = pneg %p2828_p10  ;;  %s239_s22 = sshll.u32 %s2727_s21, 4  ;;  %s2842_s22 = int_to_ptr.vmem [resolvable:$true] %s239_s22 }
  0x16   : > { %s2844_s24 = sshll.u32 %s2728_s23, 4  ;;  %s2570_s10 = scalar_lea.hbm %s3171_s4, 6144  ;;  %s275_s24 = int_to_ptr.vmem [resolvable:$true] %s2844_s24 }
  0x17   : > { %p2838_p12 = pnand %p3176_p9, %p2431_p11  ;;  %p2571_p13 = scmp.ne.s32.totalorder %s3171_s4, %s2570_s10 }
  0x18   : > { %p2577_p3 = scmp.lt.u32.totalorder %s2570_s10, %s3171_s4 }
  0x19   : > { %p2854_p0 = pneg %p2838_p12 }
  0x1b   : > { %p2573_p1 = pnand %p2854_p0, %p2571_p13 }
  0x1d   : > { %p2574_p2 = pneg %p2573_p1 }
  0x1f   : > { %p2579_p4 = pnand %p2577_p3, %p2574_p2 }
  0x21   : > { %2582 = shalt.err (!%p2579_p4)
}
  0x22   : > { %s2583_s25 = scalar_lea.vmem %s2834_s19, 6144  ;;  %p2591_p9 = scmp.lt.s32.totalorder %s2834_s19, %s2834_s19 }
  0x23   : > { %p2584_p7 = scmp.ne.s32.totalorder %s2834_s19, %s2583_s25  ;;  %p2592_p6 = scmp.lt.s32.totalorder %s2583_s25, %s2583_s25 }
  0x25   : > { %p2586_p8 = pnand %p2584_p7, %p2854_p0  ;;  %p2593_p13 = por %p2592_p6, %p2591_p9 }
  0x27   : > { %p2587_p11 = pneg %p2586_p8 }
  0x29   : > { %p2594_p1 = pnand %p2593_p13, %p2587_p11 }
  0x2b   : > { %2597 = shalt.err (!%p2594_p1)
}
  0x2c   : > { %s2729_s26 = smov 64   ;;  %s2730_s10 = smov 4  }
  0x2d   : > { %2437 = dma.hbm_to_vmem [thread:$0]  (!%p2838_p12), %s3171_s4, 6144, %s2834_s19, [#allocation6], %s2729_s26, %s2729_s26, %s2730_s10  }
  0x2e   : > { %s2598_s25 = scalar_lea.hbm %s3168_s1, 1536 }
  0x2f   : > { %p2599_p6 = scmp.ne.s32.totalorder %s3168_s1, %s2598_s25  ;;  %p2605_p3 = scmp.lt.u32.totalorder %s2598_s25, %s3168_s1 }
  0x31   : > { %p2601_p9 = pnand %p2599_p6, %p2854_p0 }
  0x33   : > { %p2602_p2 = pneg %p2601_p9 }
  0x35   : > { %p2607_p4 = pnand %p2605_p3, %p2602_p2 }
  0x37   : > { %2610 = shalt.err (!%p2607_p4)
}
  0x38   : > { %s2611_s19 = scalar_lea.vmem %s2842_s22, 1536  ;;  %p2619_p13 = scmp.lt.s32.totalorder %s2842_s22, %s2842_s22 }
  0x39   : > { %p2612_p7 = scmp.ne.s32.totalorder %s2842_s22, %s2611_s19  ;;  %p2620_p1 = scmp.lt.s32.totalorder %s2611_s19, %s2611_s19 }
  0x3b   : > { %p2614_p8 = pnand %p2612_p7, %p2854_p0  ;;  %p2621_p6 = por %p2620_p1, %p2619_p13 }
  0x3d   : > { %p2615_p11 = pneg %p2614_p8 }
  0x3f   : > { %p2622_p9 = pnand %p2621_p6, %p2615_p11 }
  0x41   : > { %2625 = shalt.err (!%p2622_p9)
}
  0x42   : > { %2434 = dma.hbm_to_vmem [thread:$0]  (!%p2838_p12), %s3168_s1, 1536, %s2842_s22, [#allocation3], %s2729_s26, %s2729_s26, %s2730_s10  }
  0x43   : > { %s2626_s12 = scalar_lea.hbm %s3173_s6, 2048 }
  0x44   : > { %p2627_p2 = scmp.ne.s32.totalorder %s3173_s6, %s2626_s12  ;;  %p2633_p7 = scmp.lt.u32.totalorder %s2626_s12, %s3173_s6 }
  0x46   : > { %p2629_p3 = pnand %p2627_p2, %p2854_p0 }
  0x48   : > { %p2630_p4 = pneg %p2629_p3 }
  0x4a   : > { %p2635_p8 = pnand %p2633_p7, %p2630_p4 }
  0x4c   : > { %2638 = shalt.err (!%p2635_p8)
}
  0x4d   : > { %s2639_s19 = scalar_lea.vmem %s275_s24, 2048  ;;  %p2647_p6 = scmp.lt.s32.totalorder %s275_s24, %s275_s24 }
  0x4e   : > { %p2640_p11 = scmp.ne.s32.totalorder %s275_s24, %s2639_s19  ;;  %p2648_p9 = scmp.lt.s32.totalorder %s2639_s19, %s2639_s19 }
  0x50   : > { %p2642_p13 = pnand %p2640_p11, %p2854_p0  ;;  %p2649_p5 = por %p2648_p9, %p2647_p6 }
  0x52   : > { %p2643_p1 = pneg %p2642_p13 }
  0x54   : > { %p2650_p10 = pnand %p2649_p5, %p2643_p1 }
  0x56   : > { %2653 = shalt.err (!%p2650_p10)
}
  0x57   : > { %2440 = dma.hbm_to_vmem [thread:$0]  (!%p2838_p12), %s3173_s6, 2048, %s275_s24, [#allocation6], %s2729_s26, %s2729_s26, %s2730_s10  }
  0x58   : > { %p3192_p2 = scmp.ne.s32.totalorder %s3189_s17, 0 }
  0x59   : > { %p3193_p0 = scmp.eq.s32.totalorder (!%p3192_p2), %s2800_s9, 0 }
  0x5a   : > { %301 = sbr.rel (%p3192_p2) target bundleno = 1487 (0x5cf), region = 52 }
  0x61   : > { %2699 = dma.done.wait (%p3193_p0), [#allocation3], 1536   ;;  %p3194_p3 = pmov %p3193_p0 }
  0x62   : > { %p3195_p5 = pmov %p3193_p0 }
  0x63   : > { %2701 = vsyncadd (%p3194_p3), [#allocation3], 4294965760 }
  0x64   : > { %2703 = dma.done.wait (%p3195_p5), [#allocation6], 8192   ;;  %p3196_p10 = pmov %p3193_p0 }
  0x65   : > { %p343_p4 = scmp.lt.s32.totalorder %s2800_s9, 1  ;;  %v2731_v0 = vmov 0.0   ;;  %vm2732_vm0 = vmmov 0   ;;  %v2491_v1 = vld [vmem:[#allocation2 + $0x20] sm:$0xff]   ;;  %v2493_v3 = vld [vmem:[#allocation2 + $0x28] sm:$0xff]   ;;  %v2495_v5 = vld [vmem:[#allocation2 + $0x30] sm:$0xff]  }
  0x66   : > { %2705 = vsyncadd (%p3196_p10), [#allocation6], 4294959104  ;;  %2172 = vmatprep.subr.bf16.mxu0 %v2731_v0  ;;  %2184 = vmatprep.subr.bf16.mxu1 %v2731_v0  ;;  %v2492_v2 = vld [vmem:[#allocation2] sm:$0xff]   ;;  %v2494_v4 = vld [vmem:[#allocation2 + $0x8] sm:$0xff]   ;;  %vm377_vm1 = vsmask.f32 7424 }
  0x67   : > { %2180 = vmatprep.mubr.msk.bf16.mxu0 %vm2732_vm0, %v2731_v0  ;;  %2192 = vmatprep.mubr.msk.bf16.mxu1 %vm2732_vm0, %v2731_v0  ;;  %s344_s17 = scalar_select %p343_p4, %s2800_s9, 1  ;;  %v2496_v6 = vld [vmem:[#allocation2 + $0x10] sm:$0xff]   ;;  %v2497_v9 = vld [vmem:[#allocation2 + $0x38] sm:$0xff]   ;;  %vm414_vm2 = vcmask 523264   ;;  %v2501_v18 = vld [vmem:[#allocation2 + $0x40] sm:$0xff]   ;;  %vm539_vm3 = vcmask 1046528  }
  0x68   : > { %2173 = vmatpush3.bf16.msra.mxu0 %v2491_v1  ;;  %2185 = vmatpush3.bf16.msra.mxu1 %v2492_v2  ;;  %v2498_v12 = vld [vmem:[#allocation2 + $0x18] sm:$0xff]   ;;  %v2502_v23 = vld [vmem:[#allocation2 + $0x48] sm:$0xff]   ;;  %v2503_v26 = vld [vmem:[#allocation2 + $0x50] sm:$0xff]   ;;  %vm630_vm6 = vcmask 130048   ;;  %s340_s16 = sand.u32 1, %s2716_s28   ;;  %s2066_s13 = sshll.u32 %s2800_s9, 6 }
  0x69   : > { %s2416_s20 = smul.u32 12, %s344_s17  ;;  %2174 = vmatprep.subr.bf16.mxu0 %v2731_v0  ;;  %2186 = vmatprep.subr.bf16.mxu1 %v2731_v0  ;;  %v2504_v27 = vld [vmem:[#allocation2 + $0x58] sm:$0xff]   ;;  %v2508_v29 = vld [vmem:[#allocation5 + $0x40] sm:$0xff]   ;;  %v2510_v30 = vld [vmem:[#allocation5 + $0x48] sm:$0xff]   ;;  %s1965_s12 = sshll.u32 %s340_s16, 2 }
  0x6a   : > { %v2512_v31 = vld [vmem:[#allocation5 + $0x50] sm:$0xff]   ;;  %v2514_v32 = vld [vmem:[#allocation5 + $0x58] sm:$0xff]   ;;  %v2516_v33 = vld [vmem:[#allocation5 + $0x60] sm:$0xff]   ;;  %s342_s21 = scalar_lea.vmem [#allocation8], %s1965_s12  ;;  %s3125_s22 = scalar_lea.hbm %s3175_s8, %s2066_s13 }
  0x6b   : > { %s347_s26 = scalar_lea.vmem %s3167_s0, %s2416_s20  ;;  %v2518_v34 = vld [vmem:[#allocation5 + $0x68] sm:$0xff]   ;;  %v1985_v46 = vld [vmem:[%s3169_s2] ss:$0 sm:$0xff]  ;;  %v1987_v60 = vld [vmem:[%s3170_s3 + $0x2] sm:$0x3]  ;;  %s1865_s23 = sshll.u32 %s342_s21, 4  ;;  %s3127_s23 = int_to_ptr.vmem [resolvable:$true] %s1865_s23 }
  0x6c   : > { %2175 = vmatpush3.bf16.msra.mxu0 %v2493_v3  ;;  %2187 = vmatpush3.bf16.msra.mxu1 %v2494_v4  ;;  %v349_v7 = vld [vmem:[%s347_s26] sm:$0xf]  ;;  %v350_v8 = vld [vmem:[%s347_s26 + $0x4] sm:$0xf]  ;;  %v2507_v62 = vld [vmem:[#allocation5 + $0x8] sm:$0xff]   ;;  %s1852_s9 = scalar_lea.sflag [#allocation4], %s340_s16 }
  0x6d   : > { %2176 = vmatprep.subr.bf16.mxu0 %v2731_v0  ;;  %2188 = vmatprep.subr.bf16.mxu1 %v2731_v0  ;;  %v1967_v10 = vcombine.low %v349_v7, %v350_v8  ;;  %v2500_v11 = vld [vmem:[%s347_s26 + $0x8] ss:$0 sps:$4 sm:$0x11]   ;;  %v526_v19 = vld [vmem:[%s347_s26] sm:$0xe]  ;;  %v2509_v63 = vld [vmem:[#allocation5 + $0x10] sm:$0xff]  }
  0x6e   : > { %v386_v15 = vshll.u32 %v2500_v11, 16  ;;  %v1979_v21 = vcombine.low %v526_v19, %v350_v8  ;;  %v541_v25 = vrot.slane %v2500_v11, 1  ;;  %v629_v59 = vld [vmem:[%s3170_s3] sm:$0x3]  ;;  %v2511_v1 = vld [vmem:[#allocation5 + $0x18] sm:$0xff]   ;;  %v2515_v3 = vld [vmem:[#allocation5 + $0x28] sm:$0xff]  }
  0x6f   : > { %v379_v13 = vshrl.u32 %v1967_v10, 16  ;;  %v381_v14 = vshll.u32 %v1967_v10, 16  ;;  %v2506_v61 = vld [vmem:[#allocation5] sm:$0xff]   ;;  %v2517_v4 = vld [vmem:[#allocation5 + $0x30] sm:$0xff]   ;;  %v2521_v7 = vld [vmem:[#allocation5 + $0x78] sm:$0xff]   ;;  %s2654_s29 = scalar_lea.vmem %s3127_s23, 64 }
  0x70   : > { %2177 = vmatpush3.bf16.msra.mxu0 %v2495_v5  ;;  %2189 = vmatpush3.bf16.msra.mxu1 %v2496_v6  ;;  %v388_v17 = vrot.slane %v386_v15, 1  ;;  %v540_v24 = vrot.slane %v1979_v21, 1  ;;  %v2513_v2 = vld [vmem:[#allocation5 + $0x20] sm:$0xff]   ;;  %v2519_v5 = vld [vmem:[#allocation5 + $0x38] sm:$0xff]   ;;  %v2520_v6 = vld [vmem:[#allocation5 + $0x70] sm:$0xff]   ;;  %p2655_p12 = scmp.ne.s32.totalorder %s3127_s23, %s2654_s29  ;;  %p3197_p7 = scmp.ne.s32.totalorder %s3186_s15, 0 }
  0x71   : > { %2178 = vmatprep.subr.bf16.mxu0 %v2731_v0  ;;  %2190 = vmatprep.subr.bf16.mxu1 %v2731_v0  ;;  %v383_v16 = vrot.slane %v381_v14, 1  ;;  %v2523_v14 = vld [vmem:[#allocation5 + $0x88] sm:$0xff]   ;;  %v2526_v21 = vld [vmem:[#allocation5 + $0x98] sm:$0xff]   ;;  %s2733_s17 = smov [#allocation8]  }
  0x72   : > { %v542_v28 = vsel %vm539_vm3, %v540_v24, %v541_v25  ;;  %v2525_v24 = vld [vmem:[#allocation5 + $0xc0] sm:$0xff]   ;;  %v2527_v25 = vld [vmem:[#allocation5 + $0xc8] sm:$0xff]   ;;  %p2656_p8 = pnand %p2655_p12, %p3197_p7  ;;  %s2658_s20 = sshll.u32 %s2733_s17, 4  ;;  %s2659_s20 = int_to_ptr.vmem [resolvable:$false] %s2658_s20 }
  0x73   : > { %v384_v20 = vor.u32 %v383_v16, %v379_v13  ;;  %s2660_s24 = scalar_lea.vmem %s2659_s20, 128  ;;  %p2661_p13 = scmp.lt.s32.totalorder %s3127_s23, %s2659_s20 }
  0x74   : > { %2179 = vmatpush3.bf16.msra.mxu0 %v2497_v9  ;;  %2191 = vmatpush3.bf16.msra.mxu1 %v2498_v12  ;;  %v2522_v9 = vld [vmem:[#allocation5 + $0x80] sm:$0xff]   ;;  %p2657_p11 = pneg %p2656_p8  ;;  %p2662_p1 = scmp.lt.s32.totalorder %s2660_s24, %s2654_s29 }
  0x75   : > { %2196 = vmatprep.subr.bf16.mxu0 %v2731_v0  ;;  %2208 = vmatprep.subr.bf16.mxu1 %v2731_v0  ;;  %v389_v22 = vsel %vm377_vm1, %v384_v20, %v388_v17 }
  0x76   : > { %p2663_p6 = por %p2662_p1, %p2661_p13 }
  0x77   : > { %2181 = vmatmul.mubr.msk.bf16.vlgmr.msra.gmra.mrb[0].mxu0 %vm414_vm2, %v389_v22  ;;  %2193 = vmatmul.mubr.msk.bf16.vlgmr.msra.gmra.mrb[0].mxu1 %vm414_vm2, %v1967_v10  ;;  %v2005_v22 = vld [vmem:[%s3170_s3 + $0x4] sm:$0x3] }
  0x78   : > { %2197 = vmatpush3.bf16.msra.mxu0 %v2501_v18  ;;  %2204 = vmatprep.mubr.msk.bf16.mxu0 %vm2732_vm0, %v2731_v0  ;;  %v2524_v18 = vld [vmem:[#allocation5 + $0x90] sm:$0xff]   ;;  %p2664_p9 = pnand %p2663_p6, %p2657_p11 }
  0x79   : > { %2198 = vmatprep.subr.bf16.mxu0 %v2731_v0  ;;  %2210 = vmatprep.mubr.msk.bf16.mxu1 %vm2732_vm0, %v2731_v0 }
  0x7c   : > { %2199 = vmatpush3.bf16.msra.mxu0 %v2502_v23  ;;  %v2015_v23 = vld [vmem:[%s3170_s3 + $0x6] sm:$0x3] }
  0x7d   : > { %2200 = vmatprep.subr.bf16.mxu0 %v2731_v0 }
  0x80   : > { %2201 = vmatpush3.bf16.msra.mxu0 %v2503_v26  ;;  %v2528_v26 = vld [vmem:[#allocation5 + $0xa0] sm:$0xff]  }
  0x81   : > { %2202 = vmatprep.subr.bf16.mxu0 %v2731_v0 }
  0x84   : > { %2203 = vmatpush3.bf16.msra.mxu0 %v2504_v27  ;;  %v2529_v27 = vld [vmem:[#allocation5 + $0xd0] sm:$0xff]  }
  0x85   : > { %2220 = vmatprep.subr.bf16.mxu0 %v2731_v0 }
  0x87   : > { %2205 = vmatmul.mubr.msk.bf16.vlgmr.msra.gmra.mrb[4].mxu0 %vm414_vm2, %v542_v28  ;;  %v2530_v28 = vld [vmem:[#allocation5 + $0xa8] sm:$0xff]  }
  0x88   : > { %2236 = vmatprep.mubr.msk.bf16.mxu0 %vm2732_vm0, %v2731_v0  ;;  %2221 = vmatpush3.bf16.msra.mxu0 %v2508_v29  ;;  %v2531_v29 = vld [vmem:[#allocation5 + $0xd8] sm:$0xff]  }
  0x89   : > { %2222 = vmatprep.subr.bf16.mxu0 %v2731_v0 }
  0x8c   : > { %2223 = vmatpush3.bf16.msra.mxu0 %v2510_v30  ;;  %v2532_v30 = vld [vmem:[#allocation5 + $0xb0] sm:$0xff]  }
  0x8d   : > { %2224 = vmatprep.subr.bf16.mxu0 %v2731_v0 }
  0x90   : > { %2225 = vmatpush3.bf16.msra.mxu0 %v2512_v31  ;;  %v2533_v31 = vld [vmem:[#allocation5 + $0xe0] sm:$0xff]  }
  0x91   : > { %2226 = vmatprep.subr.bf16.mxu0 %v2731_v0 }
  0x94   : > { %2227 = vmatpush3.bf16.msra.mxu0 %v2514_v32  ;;  %v2534_v32 = vld [vmem:[#allocation5 + $0xb8] sm:$0xff]  }
  0x95   : > { %2228 = vmatprep.subr.bf16.mxu0 %v2731_v0 }
  0x98   : > { %2229 = vmatpush3.bf16.msra.mxu0 %v2516_v33  ;;  %v2535_v33 = vld [vmem:[#allocation5 + $0xe8] sm:$0xff]  }
  0x99   : > { %2230 = vmatprep.subr.bf16.mxu0 %v2731_v0 }
  0x9c   : > { %2231 = vmatpush3.bf16.msra.mxu0 %v2518_v34  ;;  %v2536_v34 = vld [vmem:[#allocation5 + $0xf0] sm:$0xff]  }
  0x9d   : > { %2232 = vmatprep.subr.bf16.mxu0 %v2731_v0 }
  0xa0   : > { %2233 = vmatpush3.bf16.msra.mxu0 %v2520_v6  ;;  %v2549_v6 = vld [vmem:[#allocation5 + $0x160] sm:$0xff]  }
  0xa1   : > { %2234 = vmatprep.subr.bf16.mxu0 %v2731_v0 }
  0xa4   : > { %2235 = vmatpush3.bf16.msra.mxu0 %v2521_v7  ;;  %v2550_v7 = vld [vmem:[#allocation5 + $0x138] sm:$0xff]  }
  0xa5   : > { %2260 = vmatprep.subr.bf16.mxu0 %v2731_v0 }
 0x14a   : > { %v452_v35 = vpop.f32.mrb[0].mxu0  ;;  %v519_v36 = vpop.f32.mrb[0].mxu1 }
 0x14b   : > { %v520_v37 = vadd.f32 %v519_v36, %v452_v35  ;;  %v2182_v38 = vpop.f32.mrb[1].mxu0  ;;  %v2194_v39 = vpop.f32.mrb[1].mxu1  ;;  %v2537_v35 = vld [vmem:[#allocation5 + $0xf8] sm:$0xff]  }
 0x14c   : > { %v455_v40 = vpop.f32.mrb[2].mxu0  ;;  %v522_v41 = vpop.f32.mrb[2].mxu1 }
 0x14d   : > { %v523_v42 = vadd.f32 %v522_v41, %v455_v40  ;;  %v2183_v43 = vpop.f32.mrb[3].mxu0  ;;  %v2195_v44 = vpop.f32.mrb[3].mxu1 }
 0x15a   : > { %v604_v45 = vpop.f32.mrb[4].mxu0 }
 0x15b   : > { %v611_v47 = vadd.f32 %v604_v45, %v520_v37  ;;  %v2206_v48 = vpop.f32.mrb[5].mxu0 }
 0x15c   : > { %v607_v49 = vpop.f32.mrb[6].mxu0 }
 0x15d   : > { %v620_v50 = vadd.f32 %v1985_v46, %v611_v47  ;;  %v612_v51 = vadd.f32 %v607_v49, %v523_v42  ;;  %v2207_v52 = vpop.f32.mrb[7].mxu0 }
 0x15f   : > { %v624_v53 = vmul.f32 0.2, %v620_v50  ;;  %v621_v54 = vadd.f32 %v1985_v46, %v612_v51  ;;  %vm622_vm4 = vcmp.gt.f32.partialorder %v620_v50, 0.0  ;;  %v2025_v51 = vld [vmem:[%s3170_s3 + $0x8] sm:$0x3] }
 0x161   : > { %vm623_vm5 = vcmp.gt.f32.partialorder %v621_v54, 0.0  ;;  %v625_v55 = vmul.f32 0.2, %v621_v54  ;;  %v626_v56 = vsel %vm622_vm4, %v620_v50, %v624_v53  ;;  %v2538_v53 = vld [vmem:[#allocation5 + $0x100] sm:$0xff]  }
 0x163   : > { %v627_v57 = vsel %vm623_vm5, %v621_v54, %v625_v55 }
 0x164   : > { %v2977_v58 = vpack.c.bf16 %v627_v57, %v626_v56  ;;  %v2539_v57 = vld [vmem:[#allocation5 + $0x108] sm:$0xff]  }
 0x166   : > { %2209 = vmatpush3.bf16.msra.mxu1 %v2977_v58 }
 0x167   : > { %2214 = vmatprep.subr.bf16.mxu1 %v2731_v0 }
 0x169   : > { %2211 = vmatmul.mubr.msk.bf16.vlgmr.msra.gmra.mrb[4].mxu1 %vm630_vm6, %v629_v59  ;;  %v2035_v59 = vld [vmem:[%s3170_s3 + $0xa] sm:$0x3] }
 0x16a   : > { %2215 = vmatpush3.bf16.msra.mxu1 %v2977_v58  ;;  %2216 = vmatprep.mubr.msk.bf16.mxu1 %vm2732_vm0, %v2731_v0 }
 0x16b   : > { %2240 = vmatprep.subr.bf16.mxu1 %v2731_v0 }
 0x171   : > { %2217 = vmatmul.mubr.msk.bf16.vlgmr.msra.gmra.mrb[8].mxu1 %vm630_vm6, %v1987_v60  ;;  %v2541_v60 = vld [vmem:[#allocation5 + $0x140] sm:$0xff]  }
 0x172   : > { %2241 = vmatpush3.bf16.msra.mxu1 %v2506_v61  ;;  %2256 = vmatprep.mubr.msk.bf16.mxu1 %vm2732_vm0, %v2731_v0  ;;  %v2540_v61 = vld [vmem:[#allocation5 + $0x110] sm:$0xff]  }
 0x173   : > { %2242 = vmatprep.subr.bf16.mxu1 %v2731_v0 }
 0x176   : > { %2243 = vmatpush3.bf16.msra.mxu1 %v2507_v62  ;;  %v2543_v62 = vld [vmem:[#allocation5 + $0x148] sm:$0xff]  }
 0x177   : > { %2244 = vmatprep.subr.bf16.mxu1 %v2731_v0 }
 0x17a   : > { %2245 = vmatpush3.bf16.msra.mxu1 %v2509_v63  ;;  %v2542_v63 = vld [vmem:[#allocation5 + $0x118] sm:$0xff]  }
 0x17b   : > { %2246 = vmatprep.subr.bf16.mxu1 %v2731_v0 }
 0x17e   : > { %2247 = vmatpush3.bf16.msra.mxu1 %v2511_v1  ;;  %v2545_v1 = vld [vmem:[#allocation5 + $0x150] sm:$0xff]  }
 0x17f   : > { %2248 = vmatprep.subr.bf16.mxu1 %v2731_v0 }
 0x182   : > { %2249 = vmatpush3.bf16.msra.mxu1 %v2513_v2  ;;  %v2544_v2 = vld [vmem:[#allocation5 + $0x120] sm:$0xff]  }
 0x183   : > { %2250 = vmatprep.subr.bf16.mxu1 %v2731_v0 }
 0x186   : > { %2251 = vmatpush3.bf16.msra.mxu1 %v2515_v3  ;;  %v2546_v3 = vld [vmem:[#allocation5 + $0x128] sm:$0xff]  }
 0x187   : > { %2252 = vmatprep.subr.bf16.mxu1 %v2731_v0 }
 0x18a   : > { %2253 = vmatpush3.bf16.msra.mxu1 %v2517_v4  ;;  %v2547_v4 = vld [vmem:[#allocation5 + $0x158] sm:$0xff]  }
 0x18b   : > { %2254 = vmatprep.subr.bf16.mxu1 %v2731_v0 }
 0x18e   : > { %2255 = vmatpush3.bf16.msra.mxu1 %v2519_v5  ;;  %v2548_v5 = vld [vmem:[#allocation5 + $0x130] sm:$0xff]  }
 0x18f   : > { %2266 = vmatprep.subr.bf16.mxu1 %v2731_v0 }
 0x23c   : > { %v668_v8 = vpop.f32.mrb[4].mxu1 }
 0x23d   : > { %v674_v10 = vpack.c.bf16 %v668_v8, %v668_v8  ;;  %v2212_v11 = vpop.f32.mrb[5].mxu1  ;;  %v2551_v8 = vld [vmem:[#allocation5 + $0x168] sm:$0xff]  }
 0x23e   : > { %v671_v12 = vpop.f32.mrb[6].mxu1 }
 0x23f   : > { %v2213_v13 = vpop.f32.mrb[7].mxu1  ;;  %2257 = vmatmul.mubr.bf16.vlgmr.msra.gmra.mrb[12].mxu1 %v674_v10  ;;  %v2553_v10 = vld [vmem:[#allocation5 + $0x178] sm:$0xff]  }
 0x240   : > { %2267 = vmatpush3.bf16.msra.mxu1 %v2522_v9  ;;  %2282 = vmatprep.mubr.msk.bf16.mxu1 %vm2732_vm0, %v2731_v0  ;;  %v2552_v9 = vld [vmem:[#allocation5 + $0x170] sm:$0xff]  }
 0x241   : > { %2268 = vmatprep.subr.bf16.mxu1 %v2731_v0 }
 0x244   : > { %v730_v15 = vpop.f32.mrb[8].mxu1  ;;  %2269 = vmatpush3.bf16.msra.mxu1 %v2523_v14 }
 0x245   : > { %v736_v16 = vpack.c.bf16 %v730_v15, %v730_v15  ;;  %v2218_v17 = vpop.f32.mrb[9].mxu1  ;;  %2270 = vmatprep.subr.bf16.mxu1 %v2731_v0 }
 0x246   : > { %v733_v19 = vpop.f32.mrb[10].mxu1 }
 0x247   : > { %2237 = vmatmul.mubr.bf16.vlgmr.msra.gmra.mrb[8].mxu0 %v736_v16  ;;  %v2219_v20 = vpop.f32.mrb[11].mxu1 }
 0x248   : > { %2261 = vmatpush3.bf16.msra.mxu0 %v2977_v58  ;;  %2262 = vmatprep.mubr.msk.bf16.mxu0 %vm2732_vm0, %v2731_v0 }
 0x249   : > { %2286 = vmatprep.subr.bf16.mxu0 %v2731_v0  ;;  %2271 = vmatpush3.bf16.msra.mxu1 %v2524_v18 }
 0x24a   : > { %2272 = vmatprep.subr.bf16.mxu1 %v2731_v0 }
 0x24d   : > { %2273 = vmatpush3.bf16.msra.mxu1 %v2526_v21 }
 0x24e   : > { %2274 = vmatprep.subr.bf16.mxu1 %v2731_v0 }
 0x24f   : > { %2263 = vmatmul.mubr.msk.bf16.vlgmr.msra.gmra.mrb[12].mxu0 %vm630_vm6, %v2005_v22 }
 0x250   : > { %2287 = vmatpush3.bf16.msra.mxu0 %v2977_v58  ;;  %2288 = vmatprep.mubr.msk.bf16.mxu0 %vm2732_vm0, %v2731_v0 }
 0x251   : > { %2292 = vmatprep.subr.bf16.mxu0 %v2731_v0  ;;  %2275 = vmatpush3.bf16.msra.mxu1 %v2528_v26 }
 0x252   : > { %2276 = vmatprep.subr.bf16.mxu1 %v2731_v0 }
 0x255   : > { %2277 = vmatpush3.bf16.msra.mxu1 %v2530_v28 }
 0x256   : > { %2278 = vmatprep.subr.bf16.mxu1 %v2731_v0 }
 0x257   : > { %2289 = vmatmul.mubr.msk.bf16.vlgmr.msra.gmra.mrb[16].mxu0 %vm630_vm6, %v2015_v23 }
 0x258   : > { %2293 = vmatpush3.bf16.msra.mxu0 %v2525_v24  ;;  %2308 = vmatprep.mubr.msk.bf16.mxu0 %vm2732_vm0, %v2731_v0 }
 0x259   : > { %2294 = vmatprep.subr.bf16.mxu0 %v2731_v0  ;;  %2279 = vmatpush3.bf16.msra.mxu1 %v2532_v30  ;;  %v2556_v30 = vld [vmem:[#allocation7 + $0x40] sm:$0xff]  }
 0x25a   : > { %2280 = vmatprep.subr.bf16.mxu1 %v2731_v0 }
 0x25c   : > { %2295 = vmatpush3.bf16.msra.mxu0 %v2527_v25 }
 0x25d   : > { %2296 = vmatprep.subr.bf16.mxu0 %v2731_v0  ;;  %2281 = vmatpush3.bf16.msra.mxu1 %v2534_v32 }
 0x25e   : > { %2312 = vmatprep.subr.bf16.mxu1 %v2731_v0 }
 0x260   : > { %2297 = vmatpush3.bf16.msra.mxu0 %v2529_v27  ;;  %v1549_v27 = vld [vmem:[%s3172_s5] sm:$0x3] }
 0x261   : > { %2298 = vmatprep.subr.bf16.mxu0 %v2731_v0 }
 0x264   : > { %2299 = vmatpush3.bf16.msra.mxu0 %v2531_v29 }
 0x265   : > { %2300 = vmatprep.subr.bf16.mxu0 %v2731_v0 }
 0x268   : > { %2301 = vmatpush3.bf16.msra.mxu0 %v2533_v31 }
 0x269   : > { %2302 = vmatprep.subr.bf16.mxu0 %v2731_v0 }
 0x26c   : > { %2303 = vmatpush3.bf16.msra.mxu0 %v2535_v33  ;;  %v2558_v33 = vld [vmem:[#allocation7 + $0x48] sm:$0xff]  }
 0x26d   : > { %2304 = vmatprep.subr.bf16.mxu0 %v2731_v0 }
 0x270   : > { %2305 = vmatpush3.bf16.msra.mxu0 %v2536_v34  ;;  %v2047_v34 = vld [vmem:[%s3172_s5 + $0x2] sm:$0x3] }
 0x271   : > { %2306 = vmatprep.subr.bf16.mxu0 %v2731_v0 }
 0x274   : > { %2307 = vmatpush3.bf16.msra.mxu0 %v2537_v35  ;;  %v2554_v35 = vld [vmem:[#allocation7] sm:$0xff]  }
 0x275   : > { %2338 = vmatprep.subr.bf16.mxu0 %v2731_v0 }
 0x312   : > { %v924_v36 = vpop.f32.mrb[12].mxu1 }
 0x313   : > { %v2258_v37 = vpop.f32.mrb[13].mxu1 }
 0x314   : > { %v927_v38 = vpop.f32.mrb[14].mxu1  ;;  %v2557_v37 = vld [vmem:[#allocation7 + $0x10] sm:$0xff]  }
 0x315   : > { %v2259_v39 = vpop.f32.mrb[15].mxu1  ;;  %v2559_v38 = vld [vmem:[#allocation7 + $0x18] sm:$0xff]  }
 0x316   : > { %v2561_v39 = vld [vmem:[#allocation7 + $0x20] sm:$0xff]  }
 0x31a   : > { %v836_v40 = vpop.f32.mrb[8].mxu0 }
 0x31b   : > { %v3041_v41 = vadd.f32 %v924_v36, %v836_v40  ;;  %v2238_v42 = vpop.f32.mrb[9].mxu0  ;;  %v2560_v36 = vld [vmem:[#allocation7 + $0x50] sm:$0xff]   ;;  %v2562_v40 = vld [vmem:[#allocation7 + $0x58] sm:$0xff]  }
 0x31c   : > { %v839_v43 = vpop.f32.mrb[10].mxu0  ;;  %v2564_v42 = vld [vmem:[#allocation7 + $0x60] sm:$0xff]  }
 0x31d   : > { %v2239_v44 = vpop.f32.mrb[11].mxu0  ;;  %v2565_v43 = vld [vmem:[#allocation7 + $0x30] sm:$0xff]  }
 0x31e   : > { %v2566_v44 = vld [vmem:[#allocation7 + $0x68] sm:$0xff]  }
 0x322   : > { %v969_v45 = vpop.f32.mrb[12].mxu0 }
 0x323   : > { %v975_v46 = vpack.c.bf16 %v969_v45, %v969_v45  ;;  %v2264_v47 = vpop.f32.mrb[13].mxu0  ;;  %v2567_v45 = vld [vmem:[#allocation7 + $0x38] sm:$0xff]  }
 0x324   : > { %v972_v48 = vpop.f32.mrb[14].mxu0  ;;  %v2569_v47 = vld [vmem:[#allocation7 + $0x78] sm:$0xff]  }
 0x325   : > { %2283 = vmatmul.mubr.bf16.vlgmr.msra.gmra.mrb[16].mxu1 %v975_v46  ;;  %v2265_v49 = vpop.f32.mrb[15].mxu0  ;;  %v2568_v46 = vld [vmem:[#allocation7 + $0x70] sm:$0xff]  }
 0x326   : > { %2313 = vmatpush3.bf16.msra.mxu1 %v2977_v58  ;;  %2314 = vmatprep.mubr.msk.bf16.mxu1 %vm2732_vm0, %v2731_v0 }
 0x327   : > { %2318 = vmatprep.subr.bf16.mxu1 %v2731_v0 }
 0x32a   : > { %v1121_v50 = vpop.f32.mrb[16].mxu0 }
 0x32b   : > { %v1127_v52 = vpack.c.bf16 %v1121_v50, %v1121_v50  ;;  %v2290_v54 = vpop.f32.mrb[17].mxu0 }
 0x32c   : > { %v1124_v55 = vpop.f32.mrb[18].mxu0 }
 0x32d   : > { %2309 = vmatmul.mubr.bf16.vlgmr.msra.gmra.mrb[20].mxu0 %v1127_v52  ;;  %2315 = vmatmul.mubr.msk.bf16.vlgmr.msra.gmra.mrb[20].mxu1 %vm630_vm6, %v2025_v51  ;;  %v2291_v56 = vpop.f32.mrb[19].mxu0 }
 0x32e   : > { %2339 = vmatpush3.bf16.msra.mxu0 %v2977_v58  ;;  %2340 = vmatprep.mubr.msk.bf16.mxu0 %vm2732_vm0, %v2731_v0 }
 0x32f   : > { %2319 = vmatpush3.bf16.msra.mxu1 %v2538_v53  ;;  %2344 = vmatprep.subr.bf16.mxu0 %v2731_v0 }
 0x330   : > { %2320 = vmatprep.subr.bf16.mxu1 %v2731_v0  ;;  %2334 = vmatprep.mubr.msk.bf16.mxu1 %vm2732_vm0, %v2731_v0 }
 0x333   : > { %2321 = vmatpush3.bf16.msra.mxu1 %v2539_v57 }
 0x334   : > { %2322 = vmatprep.subr.bf16.mxu1 %v2731_v0 }
 0x335   : > { %2341 = vmatmul.mubr.msk.bf16.vlgmr.msra.gmra.mrb[24].mxu0 %vm630_vm6, %v2035_v59 }
 0x336   : > { %2345 = vmatpush3.bf16.msra.mxu0 %v2541_v60  ;;  %2360 = vmatprep.mubr.msk.bf16.mxu0 %vm2732_vm0, %v2731_v0 }
 0x337   : > { %2323 = vmatpush3.bf16.msra.mxu1 %v2540_v61  ;;  %2346 = vmatprep.subr.bf16.mxu0 %v2731_v0 }
 0x338   : > { %2324 = vmatprep.subr.bf16.mxu1 %v2731_v0 }
 0x33a   : > { %2347 = vmatpush3.bf16.msra.mxu0 %v2543_v62 }
 0x33b   : > { %2325 = vmatpush3.bf16.msra.mxu1 %v2542_v63  ;;  %2348 = vmatprep.subr.bf16.mxu0 %v2731_v0 }
 0x33c   : > { %2326 = vmatprep.subr.bf16.mxu1 %v2731_v0 }
 0x33e   : > { %2349 = vmatpush3.bf16.msra.mxu0 %v2545_v1 }
 0x33f   : > { %2327 = vmatpush3.bf16.msra.mxu1 %v2544_v2  ;;  %2350 = vmatprep.subr.bf16.mxu0 %v2731_v0 }
 0x340   : > { %2328 = vmatprep.subr.bf16.mxu1 %v2731_v0 }
 0x342   : > { %2351 = vmatpush3.bf16.msra.mxu0 %v2547_v4 }
 0x343   : > { %2329 = vmatpush3.bf16.msra.mxu1 %v2546_v3  ;;  %2352 = vmatprep.subr.bf16.mxu0 %v2731_v0 }
 0x344   : > { %2330 = vmatprep.subr.bf16.mxu1 %v2731_v0 }
 0x346   : > { %2353 = vmatpush3.bf16.msra.mxu0 %v2549_v6 }
 0x347   : > { %2331 = vmatpush3.bf16.msra.mxu1 %v2548_v5  ;;  %2354 = vmatprep.subr.bf16.mxu0 %v2731_v0  ;;  %v2045_v5 = vld [vmem:[%s3174_s7] ss:$0 sm:$0xff] }
 0x348   : > { %2332 = vmatprep.subr.bf16.mxu1 %v2731_v0 }
 0x34a   : > { %2355 = vmatpush3.bf16.msra.mxu0 %v2551_v8 }
 0x34b   : > { %2333 = vmatpush3.bf16.msra.mxu1 %v2550_v7  ;;  %2356 = vmatprep.subr.bf16.mxu0 %v2731_v0 }
 0x34c   : > { %2364 = vmatprep.subr.bf16.mxu1 %v2731_v0 }
 0x34e   : > { %2357 = vmatpush3.bf16.msra.mxu0 %v2552_v9 }
 0x34f   : > { %2358 = vmatprep.subr.bf16.mxu0 %v2731_v0 }
 0x352   : > { %2359 = vmatpush3.bf16.msra.mxu0 %v2553_v10 }
 0x353   : > { %2376 = vmatprep.subr.bf16.mxu0 %v2731_v0 }
 0x3f8   : > { %v1075_v11 = vpop.f32.mrb[16].mxu1 }
 0x3f9   : > { %v1081_v12 = vadd.f32 %v1075_v11, %v3041_v41  ;;  %v2284_v13 = vpop.f32.mrb[17].mxu1  ;;  %v2563_v41 = vld [vmem:[#allocation7 + $0x28] sm:$0xff]  }
 0x3fa   : > { %v1078_v14 = vpop.f32.mrb[18].mxu1 }
 0x3fb   : > { %v2285_v15 = vpop.f32.mrb[19].mxu1 }
 0x400   : > { %v1227_v16 = vpop.f32.mrb[20].mxu0  ;;  %v1273_v17 = vpop.f32.mrb[20].mxu1 }
 0x401   : > { %v3080_v18 = vadd.f32 %v1227_v16, %v1081_v12  ;;  %v1279_v19 = vpack.c.bf16 %v1273_v17, %v1273_v17  ;;  %v2316_v20 = vpop.f32.mrb[21].mxu1  ;;  %v2310_v21 = vpop.f32.mrb[21].mxu0 }
 0x402   : > { %v1276_v22 = vpop.f32.mrb[22].mxu1  ;;  %v1230_v23 = vpop.f32.mrb[22].mxu0 }
 0x403   : > { %2335 = vmatmul.mubr.bf16.vlgmr.msra.gmra.mrb[24].mxu1 %v1279_v19  ;;  %v2317_v24 = vpop.f32.mrb[23].mxu1  ;;  %v2311_v25 = vpop.f32.mrb[23].mxu0 }
 0x404   : > { %2365 = vmatpush3.bf16.msra.mxu1 %v2977_v58  ;;  %2366 = vmatprep.mubr.msk.bf16.mxu1 %vm2732_vm0, %v2731_v0 }
 0x405   : > { %2370 = vmatprep.subr.bf16.mxu1 %v2731_v0 }
 0x408   : > { %v1425_v26 = vpop.f32.mrb[24].mxu0 }
 0x409   : > { %v1431_v28 = vpack.c.bf16 %v1425_v26, %v1425_v26  ;;  %v2342_v29 = vpop.f32.mrb[25].mxu0 }
 0x40a   : > { %v1428_v31 = vpop.f32.mrb[26].mxu0 }
 0x40b   : > { %2361 = vmatmul.mubr.bf16.vlgmr.msra.gmra.mrb[28].mxu0 %v1431_v28  ;;  %2367 = vmatmul.mubr.msk.bf16.vlgmr.msra.gmra.mrb[28].mxu1 %vm630_vm6, %v1549_v27  ;;  %v2343_v32 = vpop.f32.mrb[27].mxu0 }
 0x40c   : > { %2371 = vmatpush3.bf16.msra.mxu1 %v2977_v58  ;;  %2372 = vmatprep.mubr.msk.bf16.mxu1 %vm2732_vm0, %v2731_v0  ;;  %v2555_v58 = vld [vmem:[#allocation7 + $0x8] sm:$0xff]  }
 0x40d   : > { %2396 = vmatprep.subr.bf16.mxu1 %v2731_v0  ;;  %2377 = vmatpush3.bf16.msra.mxu0 %v2556_v30 }
 0x40e   : > { %2378 = vmatprep.subr.bf16.mxu0 %v2731_v0  ;;  %2392 = vmatprep.mubr.msk.bf16.mxu0 %vm2732_vm0, %v2731_v0 }
 0x411   : > { %2379 = vmatpush3.bf16.msra.mxu0 %v2558_v33 }
 0x412   : > { %2380 = vmatprep.subr.bf16.mxu0 %v2731_v0 }
 0x413   : > { %2373 = vmatmul.mubr.msk.bf16.vlgmr.msra.gmra.mrb[32].mxu1 %vm630_vm6, %v2047_v34 }
 0x414   : > { %2397 = vmatpush3.bf16.msra.mxu1 %v2554_v35  ;;  %2412 = vmatprep.mubr.msk.bf16.mxu1 %vm2732_vm0, %v2731_v0 }
 0x415   : > { %2398 = vmatprep.subr.bf16.mxu1 %v2731_v0  ;;  %2381 = vmatpush3.bf16.msra.mxu0 %v2560_v36 }
 0x416   : > { %2382 = vmatprep.subr.bf16.mxu0 %v2731_v0 }
 0x418   : > { %2399 = vmatpush3.bf16.msra.mxu1 %v2555_v58 }
 0x419   : > { %2400 = vmatprep.subr.bf16.mxu1 %v2731_v0  ;;  %2383 = vmatpush3.bf16.msra.mxu0 %v2562_v40 }
 0x41a   : > { %2384 = vmatprep.subr.bf16.mxu0 %v2731_v0 }
 0x41c   : > { %2401 = vmatpush3.bf16.msra.mxu1 %v2557_v37 }
 0x41d   : > { %2402 = vmatprep.subr.bf16.mxu1 %v2731_v0  ;;  %2385 = vmatpush3.bf16.msra.mxu0 %v2564_v42 }
 0x41e   : > { %2386 = vmatprep.subr.bf16.mxu0 %v2731_v0 }
 0x420   : > { %2403 = vmatpush3.bf16.msra.mxu1 %v2559_v38 }
 0x421   : > { %2404 = vmatprep.subr.bf16.mxu1 %v2731_v0  ;;  %2387 = vmatpush3.bf16.msra.mxu0 %v2566_v44 }
 0x422   : > { %2388 = vmatprep.subr.bf16.mxu0 %v2731_v0 }
 0x424   : > { %2405 = vmatpush3.bf16.msra.mxu1 %v2561_v39 }
 0x425   : > { %2406 = vmatprep.subr.bf16.mxu1 %v2731_v0  ;;  %2389 = vmatpush3.bf16.msra.mxu0 %v2568_v46 }
 0x426   : > { %2390 = vmatprep.subr.bf16.mxu0 %v2731_v0 }
 0x428   : > { %2407 = vmatpush3.bf16.msra.mxu1 %v2563_v41 }
 0x429   : > { %2408 = vmatprep.subr.bf16.mxu1 %v2731_v0  ;;  %2391 = vmatpush3.bf16.msra.mxu0 %v2569_v47 }
 0x42c   : > { %2409 = vmatpush3.bf16.msra.mxu1 %v2565_v43 }
 0x42d   : > { %2410 = vmatprep.subr.bf16.mxu1 %v2731_v0 }
 0x430   : > { %2411 = vmatpush3.bf16.msra.mxu1 %v2567_v45 }
 0x4d6   : > { %v1379_v48 = vpop.f32.mrb[24].mxu1 }
 0x4d7   : > { %v1385_v49 = vadd.f32 %v1379_v48, %v3080_v18  ;;  %v2336_v50 = vpop.f32.mrb[25].mxu1 }
 0x4d8   : > { %v1382_v51 = vpop.f32.mrb[26].mxu1 }
 0x4d9   : > { %v2337_v52 = vpop.f32.mrb[27].mxu1 }
 0x4de   : > { %v1531_v53 = vpop.f32.mrb[28].mxu0  ;;  %v1587_v54 = vpop.f32.mrb[28].mxu1 }
 0x4df   : > { %v1537_v55 = vadd.f32 %v1531_v53, %v1385_v49  ;;  %v1593_v56 = vpack.c.bf16 %v1587_v54, %v1587_v54  ;;  %v2368_v57 = vpop.f32.mrb[29].mxu1  ;;  %v2362_v59 = vpop.f32.mrb[29].mxu0 }
 0x4e0   : > { %v1590_v60 = vpop.f32.mrb[30].mxu1  ;;  %v1534_v61 = vpop.f32.mrb[30].mxu0 }
 0x4e1   : > { %v2369_v62 = vpop.f32.mrb[31].mxu1  ;;  %2413 = vmatmul.mubr.bf16.vlgmr.msra.gmra.mrb[36].mxu1 %v1593_v56  ;;  %v2363_v0 = vpop.f32.mrb[31].mxu0  ;;  %v1545_v8 = vadd.f32 %v2045_v5, %v1537_v55 }
 0x4e3   : > { %v1547_v11 = vmul.f32 0.2, %v1545_v8  ;;  %vm1546_vm7 = vcmp.gt.f32.partialorder %v1545_v8, 0.0 }
 0x4e5   : > { %v1548_v15 = vsel %vm1546_vm7, %v1545_v8, %v1547_v11 }
 0x4e6   : > { %v1649_v63 = vpop.f32.mrb[32].mxu1 }
 0x4e7   : > { %v1655_v1 = vpack.c.bf16 %v1649_v63, %v1649_v63  ;;  %v2374_v2 = vpop.f32.mrb[33].mxu1 }
 0x4e8   : > { %v1652_v3 = vpop.f32.mrb[34].mxu1 }
 0x4e9   : > { %2393 = vmatmul.mubr.bf16.vlgmr.msra.gmra.mrb[32].mxu0 %v1655_v1  ;;  %v2375_v4 = vpop.f32.mrb[35].mxu1 }
 0x5b4   : > { %v1843_v6 = vpop.f32.mrb[36].mxu1 }
 0x5b5   : > { %v2414_v7 = vpop.f32.mrb[37].mxu1 }
 0x5b6   : > { %v1846_v9 = vpop.f32.mrb[38].mxu1 }
 0x5b7   : > { %v2415_v10 = vpop.f32.mrb[39].mxu1 }
 0x5bc   : > { %v1755_v12 = vpop.f32.mrb[32].mxu0 }
 0x5bd   : > { %v1844_v13 = vadd.f32 %v1843_v6, %v1755_v12  ;;  %v2394_v14 = vpop.f32.mrb[33].mxu0 }
 0x5be   : > { %v1758_v16 = vpop.f32.mrb[34].mxu0 }
 0x5bf   : > { %v1849_v17 = vadd.f32 %v1844_v13, %v1548_v15  ;;  %v2395_v18 = vpop.f32.mrb[35].mxu0 }
 0x5c1   : > { %1850 = vst [vmem:[%s342_s21] sm:$0xf] %v1849_v17 }
 0x5c2   : > { %2667 = shalt.err (!%p2664_p9)
}
 0x5c3   : > { %s2668_s18 = scalar_lea.hbm %s3125_s22, 64  ;;  %s2672_s11 = scalar_lea.hbm %s3175_s8, 128 }
 0x5c4   : > { %p2669_p2 = scmp.ne.s32.totalorder %s3125_s22, %s2668_s18  ;;  %p2673_p5 = scmp.lt.u32.totalorder %s3125_s22, %s3175_s8 }
 0x5c5   : > { %p2674_p10 = scmp.lt.u32.totalorder %s2672_s11, %s2668_s18  ;;  %p2676_p12 = scmp.lt.u32.totalorder %s2668_s18, %s3125_s22 }
 0x5c6   : > { %p2670_p0 = pnand %p2669_p2, %p3197_p7 }
 0x5c7   : > { %p2675_p4 = por %p2674_p10, %p2673_p5 }
 0x5c8   : > { %p2671_p3 = pneg %p2670_p0 }
 0x5c9   : > { %p2677_p8 = por %p2676_p12, %p2675_p4 }
 0x5cb   : > { %p2678_p11 = pnand %p2677_p8, %p2671_p3 }
 0x5cd   : > { %2681 = shalt.err (!%p2678_p11)
}
 0x5ce   : > { %2429 = dma.vmem_to_hbm [thread:$0]  (%p3197_p7), %s3127_s23, 64, %s3125_s22, %s1852_s9  }
 0x5cf PF: > { %s3198_s12 = sld [smem:[#allocation15_spill]]  ;;  %p2451_p13 = scmp.ge.s32.totalorder %s2724_s30, 2 }
 0x5d0   : > { %s1877_s13 = sand.u32 1, %s2712_s27  }
 0x5d1   : > { %s1878_s21 = scalar_lea.sflag [#allocation4], %s1877_s13 }
 0x5d5   : > { %p3199_p1 = scmp.ne.s32.totalorder %s3198_s12, 0 }
 0x5d7   : > { %p2442_p6 = pnand %p2451_p13, %p3199_p1 }
 0x5d9   : > { %2707 = dma.done.wait (!%p2442_p6), %s1878_s21, 64  }
 0x5da   : > { %2709 = vsyncadd (!%p2442_p6), %s1878_s21, 4294967232  ;;  %s3200_s30 = sld [smem:[#allocation13_spill]]  ;;  %s3201_s25 = sld [smem:[#allocation12_spill]] }
 0x5db   : > { %s3202_s29 = sld [smem:[#allocation14_spill]]  ;;  %s3203_s27 = smov %s2716_s28 }
 0x5e0   : > { %p20_p9 = scmp.ge.s32.totalorder %s3200_s30, 4   ;;  %s3204_s28 = smov %s3201_s25 }
 0x5e2   :  { %22 = sbr.rel (!%p20_p9) target bundleno = 5 (0x5), region = 114 }
 0x5e9   :  { %1883 = vsyncpa [#allocation3], 1 }
 0x5ea   :  { %1885 = vsyncpa [#allocation3 + $0x1], 1 }
 0x5eb   :  { %1886 = vsyncpa [#allocation6], 1 }
 0x5ec   :  { %1887 = vsyncpa [#allocation4], 1 }
 0x5ed   :  { %1889 = vsyncpa [#allocation4 + $0x1], 1 }

</bundles_post_ra>
